<compile_context>
chip_gen: v7x
topology: tpu7x:2x2x1
jax: 0.10.0
libtpu: 0.0.40
codegen_flags: <defaults>
</compile_context>

<pallas_src>
import functools

import jax
import jax.numpy as jnp
from jax.experimental import pallas as pl
from jax.experimental.pallas import tpu as pltpu

LANE = 128
SUBLANE = 16  # multiple of 8 (f32) and 16 (bf16 packing) -> safe for both dtypes


def _rup(n, m):
    return ((n + m - 1) // m) * m


def vae_kernel(x_ref, eps_ref, w1_ref, wh_ref, w2_ref, w3_ref,
               b1_ref, bh_ref, b2_ref, b3_ref, out_ref, *, Dp, Lp):
    """One batch tile of the full VAE forward.

    x_ref  : (TB, Dp)        bf16, zero-padded input features
    eps_ref: (TB, Lp)        f32, zero-padded reparameterization noise
    w*_ref : bf16 weights, each zero-padded to its own lane multiple:
             w1 (Dp,Hp)  wh (Hp,2Lp)=[w_mu|w_logvar]  w2 (Lp,Hp)  w3 (Hp,Dp)
    b*_ref : f32 bias rows (1, ...), zero-padded
    out_ref: (TB, Dp + 2*Lp) f32, packed [recon | mu | logvar]
    """
    f32 = jnp.float32
    bf16 = jnp.bfloat16

    # ---- encode ----
    h = jnp.dot(x_ref[...], w1_ref[...], preferred_element_type=f32) + b1_ref[...]
    h = jnp.maximum(h, 0.0)                                     # relu (f32)

    # fused mu|logvar head: single MXU pass over h
    head = (jnp.dot(h.astype(bf16), wh_ref[...], preferred_element_type=f32)
            + bh_ref[...])
    mu = head[:, 0:Lp]
    logvar = head[:, Lp:2 * Lp]

    # ---- reparameterize (f32): z = mu + eps * exp(0.5 * logvar) ----
    z = mu + eps_ref[...] * jnp.exp(0.5 * logvar)

    # ---- decode ----
    h2 = (jnp.dot(z.astype(bf16), w2_ref[...], preferred_element_type=f32)
          + b2_ref[...])
    h2 = jnp.maximum(h2, 0.0)                                   # relu (f32)
    logits = (jnp.dot(h2.astype(bf16), w3_ref[...], preferred_element_type=f32)
              + b3_ref[...])
    # sigmoid via a single EUP tanh (exact; cheaper than exp + reciprocal)
    recon = 0.5 * (jnp.tanh(0.5 * logits) + 1.0)

    # single lane-dense output slab, 128-aligned unmasked stores
    out_ref[:, 0:Dp] = recon
    out_ref[:, Dp:Dp + Lp] = mu
    out_ref[:, Dp + Lp:Dp + 2 * Lp] = logvar


def init_linear(key, in_dim, out_dim):
    """PyTorch-style Linear init, weight already transposed to (in, out)."""
    kw, kb = jax.random.split(key)
    bound = 1.0 / (in_dim ** 0.5)
    w = jax.random.uniform(kw, (in_dim, out_dim), jnp.float32, -bound, bound)
    b = jax.random.uniform(kb, (1, out_dim), jnp.float32, -bound, bound)
    return w, b


def make_vae_params(key, input_dim, hidden_dim, latent_dim):
    ks = jax.random.split(key, 5)
    w1, b1 = init_linear(ks[0], input_dim, hidden_dim)     # fc1
    wmu, bmu = init_linear(ks[1], hidden_dim, latent_dim)  # fc_mu
    wlv, blv = init_linear(ks[2], hidden_dim, latent_dim)  # fc_logvar
    w2, b2 = init_linear(ks[3], latent_dim, hidden_dim)    # fc2
    w3, b3 = init_linear(ks[4], hidden_dim, input_dim)     # fc3
    return (w1, b1, wmu, bmu, wlv, blv, w2, b2, w3, b3)


def pack_vae_params(params, input_dim, hidden_dim, latent_dim):
    """Zero-pad each Linear to its own lane multiple; weights stored in bf16
    (halves DMA + resident VMEM), biases kept in f32. Padding is exactly zero
    so nothing leaks through padded lanes."""
    (w1, b1, wmu, bmu, wlv, blv, w2, b2, w3, b3) = params
    Dp = _rup(input_dim, LANE)
    Hp = _rup(hidden_dim, LANE)
    Lp = _rup(latent_dim, LANE)

    def pad_w(w, rows, cols):
        return jnp.pad(w, ((0, rows - w.shape[0]),
                           (0, cols - w.shape[1]))).astype(jnp.bfloat16)

    def pad_b(b, cols):
        return jnp.pad(b, ((0, 0), (0, cols - b.shape[1])))   # stays f32

    w1p = pad_w(w1, Dp, Hp)
    whp = jnp.concatenate([pad_w(wmu, Hp, Lp), pad_w(wlv, Hp, Lp)], axis=1)
    w2p = pad_w(w2, Lp, Hp)
    w3p = pad_w(w3, Hp, Dp)
    b1p = pad_b(b1, Hp)
    bhp = jnp.concatenate([pad_b(bmu, Lp), pad_b(blv, Lp)], axis=1)
    b2p = pad_b(b2, Hp)
    b3p = pad_b(b3, Dp)

    dims = dict(D=input_dim, H=hidden_dim, L=latent_dim, Dp=Dp, Hp=Hp, Lp=Lp)
    return (w1p, whp, w2p, w3p, b1p, bhp, b2p, b3p), dims


def vae_forward(x, eps, packed, dims):
    (w1p, whp, w2p, w3p, b1p, bhp, b2p, b3p) = packed
    B, D = x.shape
    L = eps.shape[1]
    Dp, Hp, Lp = dims["Dp"], dims["Hp"], dims["Lp"]
    Wout = Dp + 2 * Lp

    # Batch tiling: minimize padding; guarantee >= 2 grid steps when B > 8 so
    # the "parallel" axis can shard across v7x's two TensorCores (no-op on
    # v5e/v6e). TB is a multiple of 16 (safe sublane count for bf16 + f32).
    n_steps = pl.cdiv(B, 512)
    if B > 8:
        n_steps = max(n_steps, 2)
    TB = _rup(pl.cdiv(B, n_steps), SUBLANE)
    Bp = _rup(B, TB)
    n_steps = Bp // TB

    x_p = jnp.pad(x.astype(jnp.bfloat16), ((0, Bp - B), (0, Dp - D)))
    eps_p = jnp.pad(eps.astype(jnp.float32), ((0, Bp - B), (0, Lp - L)))

    kernel = functools.partial(vae_kernel, Dp=Dp, Lp=Lp)

    def batch_spec(shape):
        return pl.BlockSpec(shape, lambda i: (i, 0))

    def resident(shape):
        # constant index_map -> never re-fetched; single buffer saves VMEM
        return pl.BlockSpec(shape, lambda i: (0, 0),
                            pipeline_mode=pl.Buffered(1))

    mm_weights = Dp * Hp + Hp * 2 * Lp + Lp * Hp + Hp * Dp
    cost = pl.CostEstimate(
        flops=2 * Bp * mm_weights,
        transcendentals=Bp * (Lp + Dp),          # exp(0.5*logvar) + tanh(sigmoid)
        bytes_accessed=(Bp * Dp * 2 + Bp * Lp * 4          # x (bf16) + eps (f32)
                        + 2 * mm_weights                    # bf16 weights
                        + 4 * (2 * Hp + 2 * Lp + Dp)        # f32 biases
                        + Bp * Wout * 4),                   # f32 output slab
    )

    out = pl.pallas_call(
        kernel,
        out_shape=jax.ShapeDtypeStruct((Bp, Wout), jnp.float32),
        grid=(n_steps,),
        in_specs=[
            batch_spec((TB, Dp)),        # x, batch-tiled
            batch_spec((TB, Lp)),        # eps, batch-tiled
            resident((Dp, Hp)),          # fc1 weight
            resident((Hp, 2 * Lp)),      # fused fc_mu|fc_logvar weight
            resident((Lp, Hp)),          # fc2 weight
            resident((Hp, Dp)),          # fc3 weight
            resident((1, Hp)),           # fc1 bias
            resident((1, 2 * Lp)),       # fused head bias
            resident((1, Hp)),           # fc2 bias
            resident((1, Dp)),           # fc3 bias
        ],
        out_specs=pl.BlockSpec((TB, Wout), lambda i: (i, 0)),
        compiler_params=pltpu.CompilerParams(
            dimension_semantics=("parallel",)),
        cost_estimate=cost,
    )(x_p, eps_p, w1p, whp, w2p, w3p, b1p, bhp, b2p, b3p)

    recon = out[:B, 0:D]
    mu = out[:B, Dp:Dp + L]
    logvar = out[:B, Dp + Lp:Dp + Lp + L]
    return recon, mu, logvar


def vae_forward_ref(x, eps, params):
    """Plain-JAX f32 reference for sanity checking."""
    (w1, b1, wmu, bmu, wlv, blv, w2, b2, w3, b3) = params
    h = jnp.maximum(x @ w1 + b1, 0.0)
    mu = h @ wmu + bmu
    logvar = h @ wlv + blv
    z = mu + eps * jnp.exp(0.5 * logvar)
    h2 = jnp.maximum(z @ w2 + b2, 0.0)
    recon = jax.nn.sigmoid(h2 @ w3 + b3)
    return recon, mu, logvar


if __name__ == "__main__":
    # Small shapes consistent with the module: hidden_dim=5, latent_dim=3 as in
    # the training script; input_dim (number of features) chosen as 16.
    batch = 8
    input_dim = 16
    hidden_dim = 5
    latent_dim = 3

    key = jax.random.PRNGKey(0)
    k_x, k_eps, k_params = jax.random.split(key, 3)

    x = jax.random.normal(k_x, (batch, input_dim), jnp.float32)
    eps = jax.random.normal(k_eps, (batch, latent_dim), jnp.float32)
    params = make_vae_params(k_params, input_dim, hidden_dim, latent_dim)
    packed, dims = pack_vae_params(params, input_dim, hidden_dim, latent_dim)

    recon, mu, logvar = vae_forward(x, eps, packed, dims)
    jax.block_until_ready((recon, mu, logvar))

    # correctness check against the pure-JAX f32 reference; kernel matmuls run
    # in bf16 on the MXU so use modest tolerances (sigmoid itself is exact now)
    r_ref, mu_ref, lv_ref = vae_forward_ref(x, eps, params)
    assert jnp.allclose(mu, mu_ref, atol=5e-2), "mu mismatch"
    assert jnp.allclose(logvar, lv_ref, atol=5e-2), "logvar mismatch"
    assert jnp.allclose(recon, r_ref, atol=2e-2), "recon mismatch"

    print("KERNEL_OK")
</pallas_src>

<mosaic_0001>
module attributes {stable_mosaic.version = 11 : i64} {
  func.func @vae_kernel(%arg0: i32, %arg1: memref<16x128xbf16, #tpu.memory_space<vmem>>, %arg2: memref<16x128xf32, #tpu.memory_space<vmem>>, %arg3: memref<128x128xbf16, #tpu.memory_space<vmem>>, %arg4: memref<128x256xbf16, #tpu.memory_space<vmem>>, %arg5: memref<128x128xbf16, #tpu.memory_space<vmem>>, %arg6: memref<128x128xbf16, #tpu.memory_space<vmem>>, %arg7: memref<1x128xf32, #tpu.memory_space<vmem>>, %arg8: memref<1x256xf32, #tpu.memory_space<vmem>>, %arg9: memref<1x128xf32, #tpu.memory_space<vmem>>, %arg10: memref<1x128xf32, #tpu.memory_space<vmem>>, %arg11: memref<16x384xf32, #tpu.memory_space<vmem>>) attributes {dimension_semantics = [#tpu.dimension_semantics<parallel>], iteration_bounds = array<i64: 1>, scalar_prefetch = 0 : i64, scratch_operands = 0 : i64, tpu.core_type = #tpu.core_type<tc>, window_params = [{transform_indices = @transform_0, window_bounds = array<i64: 16, 128>}, {transform_indices = @transform_1, window_bounds = array<i64: 16, 128>}, {pipeline_mode = #tpu.pipeline_mode<synchronous>, transform_indices = @transform_2, window_bounds = array<i64: 128, 128>}, {pipeline_mode = #tpu.pipeline_mode<synchronous>, transform_indices = @transform_3, window_bounds = array<i64: 128, 256>}, {pipeline_mode = #tpu.pipeline_mode<synchronous>, transform_indices = @transform_4, window_bounds = array<i64: 128, 128>}, {pipeline_mode = #tpu.pipeline_mode<synchronous>, transform_indices = @transform_5, window_bounds = array<i64: 128, 128>}, {pipeline_mode = #tpu.pipeline_mode<synchronous>, transform_indices = @transform_6, window_bounds = array<i64: 1, 128>}, {pipeline_mode = #tpu.pipeline_mode<synchronous>, transform_indices = @transform_7, window_bounds = array<i64: 1, 256>}, {pipeline_mode = #tpu.pipeline_mode<synchronous>, transform_indices = @transform_8, window_bounds = array<i64: 1, 128>}, {pipeline_mode = #tpu.pipeline_mode<synchronous>, transform_indices = @transform_9, window_bounds = array<i64: 1, 128>}, {transform_indices = @transform_10, window_bounds = array<i64: 16, 384>}]} {
    %c0 = arith.constant 0 : index
    %c0_0 = arith.constant 0 : index
    %0 = vector.load %arg1[%c0, %c0_0] : memref<16x128xbf16, #tpu.memory_space<vmem>>, vector<16x128xbf16>
    %c0_1 = arith.constant 0 : index
    %c0_2 = arith.constant 0 : index
    %1 = vector.load %arg3[%c0_1, %c0_2] : memref<128x128xbf16, #tpu.memory_space<vmem>>, vector<128x128xbf16>
    %cst = arith.constant dense<0.000000e+00> : vector<16x128xf32>
    %2 = tpu.matmul %0, %1, %cst {dimension_numbers = #tpu.dot_dimension_numbers<[1], [0], [0], [1], [0, 0, 1, 1], [], []>} : vector<16x128xbf16>, vector<128x128xbf16>, vector<16x128xf32> -> vector<16x128xf32>
    %c0_3 = arith.constant 0 : index
    %c0_4 = arith.constant 0 : index
    %3 = vector.load %arg7[%c0_3, %c0_4] : memref<1x128xf32, #tpu.memory_space<vmem>>, vector<1x128xf32>
    %4 = vector.broadcast %3 : vector<1x128xf32> to vector<16x128xf32>
    %5 = arith.addf %2, %4 : vector<16x128xf32>
    %cst_5 = arith.constant 0.000000e+00 : f32
    %6 = vector.broadcast %cst_5 : f32 to vector<16x128xf32>
    %7 = arith.maximumf %5, %6 : vector<16x128xf32>
    %8 = arith.truncf %7 : vector<16x128xf32> to vector<16x128xbf16>
    %c0_6 = arith.constant 0 : index
    %c0_7 = arith.constant 0 : index
    %9 = vector.load %arg4[%c0_6, %c0_7] : memref<128x256xbf16, #tpu.memory_space<vmem>>, vector<128x256xbf16>
    %cst_8 = arith.constant dense<0.000000e+00> : vector<16x256xf32>
    %10 = tpu.matmul %8, %9, %cst_8 {dimension_numbers = #tpu.dot_dimension_numbers<[1], [0], [0], [1], [0, 0, 1, 1], [], []>} : vector<16x128xbf16>, vector<128x256xbf16>, vector<16x256xf32> -> vector<16x256xf32>
    %c0_9 = arith.constant 0 : index
    %c0_10 = arith.constant 0 : index
    %11 = vector.load %arg8[%c0_9, %c0_10] : memref<1x256xf32, #tpu.memory_space<vmem>>, vector<1x256xf32>
    %12 = vector.broadcast %11 : vector<1x256xf32> to vector<16x256xf32>
    %13 = arith.addf %10, %12 : vector<16x256xf32>
    %14 = vector.extract_strided_slice %13 {offsets = [0, 0], sizes = [16, 128], strides = [1, 1]} : vector<16x256xf32> to vector<16x128xf32>
    %15 = vector.extract_strided_slice %13 {offsets = [0, 128], sizes = [16, 128], strides = [1, 1]} : vector<16x256xf32> to vector<16x128xf32>
    %c0_11 = arith.constant 0 : index
    %c0_12 = arith.constant 0 : index
    %16 = vector.load %arg2[%c0_11, %c0_12] : memref<16x128xf32, #tpu.memory_space<vmem>>, vector<16x128xf32>
    %cst_13 = arith.constant 5.000000e-01 : f32
    %17 = vector.broadcast %cst_13 : f32 to vector<16x128xf32>
    %18 = arith.mulf %17, %15 : vector<16x128xf32>
    %19 = math.exp %18 : vector<16x128xf32>
    %20 = arith.mulf %16, %19 : vector<16x128xf32>
    %21 = arith.addf %14, %20 : vector<16x128xf32>
    %22 = arith.truncf %21 : vector<16x128xf32> to vector<16x128xbf16>
    %c0_14 = arith.constant 0 : index
    %c0_15 = arith.constant 0 : index
    %23 = vector.load %arg5[%c0_14, %c0_15] : memref<128x128xbf16, #tpu.memory_space<vmem>>, vector<128x128xbf16>
    %cst_16 = arith.constant dense<0.000000e+00> : vector<16x128xf32>
    %24 = tpu.matmul %22, %23, %cst_16 {dimension_numbers = #tpu.dot_dimension_numbers<[1], [0], [0], [1], [0, 0, 1, 1], [], []>} : vector<16x128xbf16>, vector<128x128xbf16>, vector<16x128xf32> -> vector<16x128xf32>
    %c0_17 = arith.constant 0 : index
    %c0_18 = arith.constant 0 : index
    %25 = vector.load %arg9[%c0_17, %c0_18] : memref<1x128xf32, #tpu.memory_space<vmem>>, vector<1x128xf32>
    %26 = vector.broadcast %25 : vector<1x128xf32> to vector<16x128xf32>
    %27 = arith.addf %24, %26 : vector<16x128xf32>
    %cst_19 = arith.constant 0.000000e+00 : f32
    %28 = vector.broadcast %cst_19 : f32 to vector<16x128xf32>
    %29 = arith.maximumf %27, %28 : vector<16x128xf32>
    %30 = arith.truncf %29 : vector<16x128xf32> to vector<16x128xbf16>
    %c0_20 = arith.constant 0 : index
    %c0_21 = arith.constant 0 : index
    %31 = vector.load %arg6[%c0_20, %c0_21] : memref<128x128xbf16, #tpu.memory_space<vmem>>, vector<128x128xbf16>
    %cst_22 = arith.constant dense<0.000000e+00> : vector<16x128xf32>
    %32 = tpu.matmul %30, %31, %cst_22 {dimension_numbers = #tpu.dot_dimension_numbers<[1], [0], [0], [1], [0, 0, 1, 1], [], []>} : vector<16x128xbf16>, vector<128x128xbf16>, vector<16x128xf32> -> vector<16x128xf32>
    %c0_23 = arith.constant 0 : index
    %c0_24 = arith.constant 0 : index
    %33 = vector.load %arg10[%c0_23, %c0_24] : memref<1x128xf32, #tpu.memory_space<vmem>>, vector<1x128xf32>
    %34 = vector.broadcast %33 : vector<1x128xf32> to vector<16x128xf32>
    %35 = arith.addf %32, %34 : vector<16x128xf32>
    %cst_25 = arith.constant 5.000000e-01 : f32
    %36 = vector.broadcast %cst_25 : f32 to vector<16x128xf32>
    %37 = arith.mulf %36, %35 : vector<16x128xf32>
    %38 = math.tanh %37 : vector<16x128xf32>
    %cst_26 = arith.constant 1.000000e+00 : f32
    %39 = vector.broadcast %cst_26 : f32 to vector<16x128xf32>
    %40 = arith.addf %38, %39 : vector<16x128xf32>
    %cst_27 = arith.constant 5.000000e-01 : f32
    %41 = vector.broadcast %cst_27 : f32 to vector<16x128xf32>
    %42 = arith.mulf %41, %40 : vector<16x128xf32>
    %c0_28 = arith.constant 0 : index
    %c0_29 = arith.constant 0 : index
    %43 = vector.load %arg11[%c0_28, %c0_29] : memref<16x384xf32, #tpu.memory_space<vmem>>, vector<16x128xf32>
    tpu.vector_store %arg11[%c0_28, %c0_29], %42 {strides = array<i32>} : memref<16x384xf32, #tpu.memory_space<vmem>>, vector<16x128xf32>,
    %c0_30 = arith.constant 0 : index
    %c128 = arith.constant 128 : index
    %44 = vector.load %arg11[%c0_30, %c128] : memref<16x384xf32, #tpu.memory_space<vmem>>, vector<16x128xf32>
    tpu.vector_store %arg11[%c0_30, %c128], %14 {strides = array<i32>} : memref<16x384xf32, #tpu.memory_space<vmem>>, vector<16x128xf32>,
    %c0_31 = arith.constant 0 : index
    %c256 = arith.constant 256 : index
    %45 = vector.load %arg11[%c0_31, %c256] : memref<16x384xf32, #tpu.memory_space<vmem>>, vector<16x128xf32>
    tpu.vector_store %arg11[%c0_31, %c256], %15 {strides = array<i32>} : memref<16x384xf32, #tpu.memory_space<vmem>>, vector<16x128xf32>,
    return
  }
  func.func @transform_0(%arg0: i32) -> (i32, i32) {
    %c0_i32 = arith.constant 0 : i32
    %c0_i32_0 = arith.constant 0 : i32
    return %arg0, %c0_i32 : i32, i32
  }
  func.func @transform_1(%arg0: i32) -> (i32, i32) {
    %c0_i32 = arith.constant 0 : i32
    %c0_i32_0 = arith.constant 0 : i32
    return %arg0, %c0_i32 : i32, i32
  }
  func.func @transform_2(%arg0: i32) -> (i32, i32) {
    %c0_i32 = arith.constant 0 : i32
    %c0_i32_0 = arith.constant 0 : i32
    %c0_i32_1 = arith.constant 0 : i32
    return %c0_i32, %c0_i32_0 : i32, i32
  }
  func.func @transform_3(%arg0: i32) -> (i32, i32) {
    %c0_i32 = arith.constant 0 : i32
    %c0_i32_0 = arith.constant 0 : i32
    %c0_i32_1 = arith.constant 0 : i32
    return %c0_i32, %c0_i32_0 : i32, i32
  }
  func.func @transform_4(%arg0: i32) -> (i32, i32) {
    %c0_i32 = arith.constant 0 : i32
    %c0_i32_0 = arith.constant 0 : i32
    %c0_i32_1 = arith.constant 0 : i32
    return %c0_i32, %c0_i32_0 : i32, i32
  }
  func.func @transform_5(%arg0: i32) -> (i32, i32) {
    %c0_i32 = arith.constant 0 : i32
    %c0_i32_0 = arith.constant 0 : i32
    %c0_i32_1 = arith.constant 0 : i32
    return %c0_i32, %c0_i32_0 : i32, i32
  }
  func.func @transform_6(%arg0: i32) -> (i32, i32) {
    %c0_i32 = arith.constant 0 : i32
    %c0_i32_0 = arith.constant 0 : i32
    %c0_i32_1 = arith.constant 0 : i32
    return %c0_i32, %c0_i32_0 : i32, i32
  }
  func.func @transform_7(%arg0: i32) -> (i32, i32) {
    %c0_i32 = arith.constant 0 : i32
    %c0_i32_0 = arith.constant 0 : i32
    %c0_i32_1 = arith.constant 0 : i32
    return %c0_i32, %c0_i32_0 : i32, i32
  }
  func.func @transform_8(%arg0: i32) -> (i32, i32) {
    %c0_i32 = arith.constant 0 : i32
    %c0_i32_0 = arith.constant 0 : i32
    %c0_i32_1 = arith.constant 0 : i32
    return %c0_i32, %c0_i32_0 : i32, i32
  }
  func.func @transform_9(%arg0: i32) -> (i32, i32) {
    %c0_i32 = arith.constant 0 : i32
    %c0_i32_0 = arith.constant 0 : i32
    %c0_i32_1 = arith.constant 0 : i32
    return %c0_i32, %c0_i32_0 : i32, i32
  }
  func.func @transform_10(%arg0: i32) -> (i32, i32) {
    %c0_i32 = arith.constant 0 : i32
    %c0_i32_0 = arith.constant 0 : i32
    return %arg0, %c0_i32 : i32, i32
  }
}

</mosaic_0001>

<bundles_post_ra>
// kernel: tpu_custom_call.1
= control target key start
LH: loop header
LB: loop body
LE: loop exit
PB: predicated region body
PF: predicated region fallthrough
CT: control target
= control target key end

     0   :  { %15 = vsyncpa [#allocation3], 0  ;;  %s1244_s0 = inlined_call_operand.hbm [shape: bf16[16,128], index: 0, kind: input, shape index: {}]   ;;  %s1245_s1 = inlined_call_operand.hbm [shape: f32[16,128], index: 1, kind: input, shape index: {}]   ;;  %s1246_s2 = inlined_call_operand.hbm [shape: bf16[128,128], index: 2, kind: input, shape index: {}]   ;;  %s1247_s3 = inlined_call_operand.hbm [shape: bf16[128,256], index: 3, kind: input, shape index: {}]   ;;  %s1248_s4 = inlined_call_operand.hbm [shape: bf16[128,128], index: 4, kind: input, shape index: {}]   ;;  %s1249_s5 = inlined_call_operand.hbm [shape: bf16[128,128], index: 5, kind: input, shape index: {}]   ;;  %s1250_s6 = inlined_call_operand.vmem [shape: f32[1,128], index: 6, kind: input, shape index: {}]   ;;  %s1251_s7 = inlined_call_operand.vmem [shape: f32[1,256], index: 7, kind: input, shape index: {}]   ;;  %s1252_s8 = inlined_call_operand.vmem [shape: f32[1,128], index: 8, kind: input, shape index: {}]   ;;  %s1253_s9 = inlined_call_operand.vmem [shape: f32[1,128], index: 9, kind: input, shape index: {}]   ;;  %s1254_s10 = inlined_call_operand.hbm [shape: f32[16,384], index: 10, kind: output, shape index: {}]  }
   0x1   :  { %16 = vsyncpa [#allocation6], 0 }
   0x2   :  { %17 = vsyncpa [#allocation9], 0 }
   0x3   :  { %18 = vsyncpa [#allocation12], 0 }
   0x4   :  { %19 = vsyncpa [#allocation4], 0  ;;  %s1035_s13 = smov [#allocation5]   ;;  %s871_s17 = scalar_lea.hbm %s1245_s1, 256 }
   0x5   :  { %s37_s14 = sshll.u32 %s1035_s13, 4  ;;  %p872_p0 = scmp.ne.s32.totalorder %s1245_s1, %s871_s17  ;;  %s38_s14 = int_to_ptr.vmem [resolvable:$true] %s37_s14 }
   0x6   :  { %p875_p1 = scmp.lt.u32.totalorder %s871_s17, %s1245_s1 }
   0x8   :  { %p877_p2 = pnand %p875_p1, %p872_p0 }
   0xa   :  { %880 = shalt.err (!%p877_p2)
}
   0xb   :  { %s881_s22 = scalar_lea.vmem %s38_s14, 256  ;;  %p886_p4 = scmp.lt.s32.totalorder %s38_s14, %s38_s14 }
   0xc   :  { %p882_p3 = scmp.ne.s32.totalorder %s38_s14, %s881_s22  ;;  %p887_p5 = scmp.lt.s32.totalorder %s881_s22, %s881_s22 }
   0xe   :  { %p888_p6 = por %p887_p5, %p886_p4 }
  0x10   :  { %p889_p7 = pnand %p888_p6, %p882_p3 }
  0x12   :  { %892 = shalt.err (!%p889_p7)
}
  0x13   :  { %s1036_s23 = smov 128   ;;  %s1037_s24 = smov 8  }
  0x14   :  { %43 = dma.hbm_to_vmem [thread:$0]  %s1245_s1, 256, %s38_s14, [#allocation6], %s1036_s23, %s1036_s23, %s1037_s24  }
  0x15   :  { %s1038_s27 = smov [#allocation8]   ;;  %s1039_s29 = smov [#allocation2]  }
  0x16   :  { %s61_s28 = sshll.u32 %s1038_s27, 4  ;;  %s25_s30 = sshll.u32 %s1039_s29, 4  ;;  %s62_s28 = int_to_ptr.vmem [resolvable:$true] %s61_s28  ;;  %s26_s30 = int_to_ptr.vmem [resolvable:$true] %s25_s30 }
  0x17   :  { %s893_s13 = scalar_lea.hbm %s1247_s3, 2048 }
  0x18   :  { %p894_p8 = scmp.ne.s32.totalorder %s1247_s3, %s893_s13  ;;  %p897_p9 = scmp.lt.u32.totalorder %s893_s13, %s1247_s3 }
  0x1a   :  { %p899_p10 = pnand %p897_p9, %p894_p8 }
  0x1c   :  { %902 = shalt.err (!%p899_p10)
}
  0x1d   :  { %s903_s1 = scalar_lea.vmem %s62_s28, 2048  ;;  %p908_p12 = scmp.lt.s32.totalorder %s62_s28, %s62_s28 }
  0x1e   :  { %p904_p11 = scmp.ne.s32.totalorder %s62_s28, %s903_s1  ;;  %p909_p13 = scmp.lt.s32.totalorder %s903_s1, %s903_s1 }
  0x20   :  { %p910_p0 = por %p909_p13, %p908_p12 }
  0x22   :  { %p911_p1 = pnand %p910_p0, %p904_p11 }
  0x24   :  { %914 = shalt.err (!%p911_p1)
}
  0x25   :  { %67 = dma.hbm_to_vmem [thread:$0]  %s1247_s3, 2048, %s62_s28, [#allocation9], %s1036_s23, %s1036_s23, %s1037_s24  }
  0x26   :  { %s915_s22 = scalar_lea.hbm %s1244_s0, 128 }
  0x27   :  { %p916_p2 = scmp.ne.s32.totalorder %s1244_s0, %s915_s22  ;;  %p919_p3 = scmp.lt.u32.totalorder %s915_s22, %s1244_s0 }
  0x29   :  { %p921_p4 = pnand %p919_p3, %p916_p2 }
  0x2b   :  { %924 = shalt.err (!%p921_p4)
}
  0x2c   :  { %s925_s11 = scalar_lea.vmem %s26_s30, 128  ;;  %p930_p6 = scmp.lt.s32.totalorder %s26_s30, %s26_s30 }
  0x2d   :  { %p926_p5 = scmp.ne.s32.totalorder %s26_s30, %s925_s11  ;;  %p931_p7 = scmp.lt.s32.totalorder %s925_s11, %s925_s11 }
  0x2f   :  { %p932_p8 = por %p931_p7, %p930_p6 }
  0x31   :  { %p933_p9 = pnand %p932_p8, %p926_p5 }
  0x33   :  { %936 = shalt.err (!%p933_p9)
}
  0x34   :  { %s1040_s3 = smov 64   ;;  %s1041_s23 = smov 4  }
  0x35   :  { %31 = dma.hbm_to_vmem [thread:$0]  %s1244_s0, 128, %s26_s30, [#allocation3], %s1040_s3, %s1040_s3, %s1041_s23  }
  0x36   :  { %s1042_s12 = smov [#allocation7]   ;;  %s1043_s15 = smov [#allocation10]  }
  0x37   :  { %s49_s13 = sshll.u32 %s1042_s12, 4  ;;  %s73_s16 = sshll.u32 %s1043_s15, 4  ;;  %s50_s13 = int_to_ptr.vmem [resolvable:$true] %s49_s13  ;;  %s74_s16 = int_to_ptr.vmem [resolvable:$true] %s73_s16 }
  0x38   :  { %s937_s1 = scalar_lea.hbm %s1246_s2, 1024 }
  0x39   :  { %p938_p10 = scmp.ne.s32.totalorder %s1246_s2, %s937_s1  ;;  %p941_p11 = scmp.lt.u32.totalorder %s937_s1, %s1246_s2 }
  0x3b   :  { %p943_p12 = pnand %p941_p11, %p938_p10 }
  0x3d   :  { %946 = shalt.err (!%p943_p12)
}
  0x3e   :  { %s947_s0 = scalar_lea.vmem %s50_s13, 1024  ;;  %p952_p0 = scmp.lt.s32.totalorder %s50_s13, %s50_s13 }
  0x3f   :  { %p948_p13 = scmp.ne.s32.totalorder %s50_s13, %s947_s0  ;;  %p953_p1 = scmp.lt.s32.totalorder %s947_s0, %s947_s0 }
  0x41   :  { %p954_p2 = por %p953_p1, %p952_p0 }
  0x43   :  { %p955_p3 = pnand %p954_p2, %p948_p13 }
  0x45   :  { %958 = shalt.err (!%p955_p3)
}
  0x46   :  { %55 = dma.hbm_to_vmem [thread:$0]  %s1246_s2, 1024, %s50_s13, [#allocation6], %s1040_s3, %s1040_s3, %s1041_s23  }
  0x47   :  { %s959_s27 = scalar_lea.hbm %s1248_s4, 1024 }
  0x48   :  { %p960_p4 = scmp.ne.s32.totalorder %s1248_s4, %s959_s27  ;;  %p963_p5 = scmp.lt.u32.totalorder %s959_s27, %s1248_s4 }
  0x4a   :  { %p965_p6 = pnand %p963_p5, %p960_p4 }
  0x4c   :  { %968 = shalt.err (!%p965_p6)
}
  0x4d   :  { %s969_s12 = scalar_lea.vmem %s74_s16, 1024  ;;  %p974_p8 = scmp.lt.s32.totalorder %s74_s16, %s74_s16 }
  0x4e   :  { %p970_p7 = scmp.ne.s32.totalorder %s74_s16, %s969_s12  ;;  %p975_p9 = scmp.lt.s32.totalorder %s969_s12, %s969_s12 }
  0x50   :  { %p976_p10 = por %p975_p9, %p974_p8 }
  0x52   :  { %p977_p11 = pnand %p976_p10, %p970_p7 }
  0x54   :  { %980 = shalt.err (!%p977_p11)
}
  0x55   :  { %79 = dma.hbm_to_vmem [thread:$0]  %s1248_s4, 1024, %s74_s16, [#allocation9], %s1040_s3, %s1040_s3, %s1041_s23  }
  0x56   :  { %s1044_s15 = smov [#allocation11]   ;;  %s981_s14 = scalar_lea.hbm %s1249_s5, 1024 }
  0x57   :  { %s85_s17 = sshll.u32 %s1044_s15, 4  ;;  %p982_p12 = scmp.ne.s32.totalorder %s1249_s5, %s981_s14  ;;  %s86_s17 = int_to_ptr.vmem [resolvable:$true] %s85_s17 }
  0x58   :  { %p985_p13 = scmp.lt.u32.totalorder %s981_s14, %s1249_s5 }
  0x5a   :  { %p987_p0 = pnand %p985_p13, %p982_p12 }
  0x5c   :  { %990 = shalt.err (!%p987_p0)
}
  0x5d   :  { %s991_s30 = scalar_lea.vmem %s86_s17, 1024  ;;  %p996_p2 = scmp.lt.s32.totalorder %s86_s17, %s86_s17 }
  0x5e   :  { %p992_p1 = scmp.ne.s32.totalorder %s86_s17, %s991_s30  ;;  %p997_p3 = scmp.lt.s32.totalorder %s991_s30, %s991_s30 }
  0x60   :  { %p998_p4 = por %p997_p3, %p996_p2 }
  0x62   :  { %p999_p5 = pnand %p998_p4, %p992_p1 }
  0x64   :  { %1002 = shalt.err (!%p999_p5)
}
  0x65   :  { %91 = dma.hbm_to_vmem [thread:$0]  %s1249_s5, 1024, %s86_s17, [#allocation12], %s1040_s3, %s1040_s3, %s1041_s23  }
  0x66   :  { %1025 = dma.done.wait [#allocation3], 128  }
  0x67   :  { %1026 = vsyncadd [#allocation3], 4294967168 }
  0x68   :  { %1027 = dma.done.wait [#allocation6], 1280  }
  0x69   :  { %1028 = vsyncadd [#allocation6], 4294966016 }
  0x6a   :  { %1029 = dma.done.wait [#allocation9], 3072  }
  0x6b   :  { %1030 = vsyncadd [#allocation9], 4294964224 }
  0x6c   :  { %1031 = dma.done.wait [#allocation12], 1024  }
  0x6d   :  { %1032 = vsyncadd [#allocation12], 4294966272  ;;  %v1045_v0 = vmov 0.0   ;;  %vm1046_vm0 = vmmov 0   ;;  %v814_v1 = vld [vmem:[#allocation7] sm:$0xff]   ;;  %v815_v2 = vld [vmem:[#allocation7 + $0x8] sm:$0xff]   ;;  %v260_v51 = vlaneseq }
  0x6e   :  { %738 = vmatprep.subr.bf16.mxu0 %v1045_v0  ;;  %754 = vmatprep.mubr.msk.bf16.mxu0 %vm1046_vm0, %v1045_v0  ;;  %v816_v3 = vld [vmem:[#allocation7 + $0x10] sm:$0xff]   ;;  %v817_v4 = vld [vmem:[#allocation7 + $0x18] sm:$0xff]   ;;  %v823_v5 = vld [vmem:[#allocation8 + $0x4] ss:$8 sps:$4 sm:$0xff]   ;;  %v1047_v26 = vmov 0  }
  0x6f   :  { %739 = vmatpush3.bf16.msra.mxu0 %v814_v1  ;;  %v825_v6 = vld [vmem:[#allocation8] ss:$8 sps:$4 sm:$0xff]   ;;  %350 = vmatprep.subr.bf16.mxu1 %v823_v5  ;;  %v826_v7 = vld [vmem:[#allocation8 + $0x14] ss:$8 sps:$4 sm:$0xff]   ;;  %v828_v8 = vld [vmem:[#allocation8 + $0x10] ss:$8 sps:$4 sm:$0xff]  }
  0x70   :  { %740 = vmatprep.subr.bf16.mxu0 %v1045_v0  ;;  %351 = vmatpush1.bf16.msra.mxu1 %v825_v6  ;;  %v829_v9 = vld [vmem:[#allocation8 + $0x24] ss:$8 sps:$4 sm:$0xff]   ;;  %v831_v12 = vld [vmem:[#allocation8 + $0x20] ss:$8 sps:$4 sm:$0xff]   ;;  %v832_v13 = vld [vmem:[#allocation8 + $0x34] ss:$8 sps:$4 sm:$0xff]  }
  0x71   :  { %352 = vmatprep.subr.bf16.mxu1 %v826_v7  ;;  %v818_v10 = vld [vmem:[#allocation7 + $0x20] sm:$0xff]   ;;  %v819_v11 = vld [vmem:[#allocation7 + $0x28] sm:$0xff]   ;;  %v834_v14 = vld [vmem:[#allocation8 + $0x30] ss:$8 sps:$4 sm:$0xff]   ;;  %382 = vmatprep.mubr.bf16.mxu1 %v1047_v26  ;;  %v261_v52 = vshrl.u32 %v260_v51, 7 }
  0x72   :  { %v835_v15 = vld [vmem:[#allocation8 + $0x44] ss:$8 sps:$4 sm:$0xff]   ;;  %v820_v16 = vld [vmem:[#allocation7 + $0x30] sm:$0xff]   ;;  %v837_v17 = vld [vmem:[#allocation8 + $0x40] ss:$8 sps:$4 sm:$0xff]  }
  0x73   :  { %741 = vmatpush3.bf16.msra.mxu0 %v815_v2  ;;  %v838_v18 = vld [vmem:[#allocation8 + $0x54] ss:$8 sps:$4 sm:$0xff]   ;;  %v840_v20 = vld [vmem:[#allocation8 + $0x50] ss:$8 sps:$4 sm:$0xff]   ;;  %v822_v21 = vld [vmem:[#allocation2] sm:$0xff]   ;;  %v262_v53 = vsub.s32 0, %v261_v52 }
  0x74   :  { %742 = vmatprep.subr.bf16.mxu0 %v1045_v0  ;;  %353 = vmatpush1.bf16.msra.mxu1 %v828_v8  ;;  %v821_v19 = vld [vmem:[#allocation7 + $0x38] sm:$0xff]   ;;  %v841_v22 = vld [vmem:[#allocation8 + $0x64] ss:$8 sps:$4 sm:$0xff]   ;;  %v843_v23 = vld [vmem:[#allocation8 + $0x60] ss:$8 sps:$4 sm:$0xff]   ;;  %v266_v55 = vsub.s32 1, %v261_v52 }
  0x75   :  { %354 = vmatprep.subr.bf16.mxu1 %v829_v9  ;;  %v844_v24 = vld [vmem:[#allocation8 + $0x74] ss:$8 sps:$4 sm:$0xff]   ;;  %v846_v25 = vld [vmem:[#allocation8 + $0x70] ss:$8 sps:$4 sm:$0xff]   ;;  %v847_v27 = vld [vmem:[#allocation10] sm:$0xff]  }
  0x76   :  { %v667_v28 = vld [vmem:[%s1250_s6] ss:$0 sm:$0xff]  ;;  %v849_v39 = vld [vmem:[#allocation10 + $0x10] sm:$0xff]   ;;  %v850_v40 = vld [vmem:[#allocation10 + $0x18] sm:$0xff]  }
  0x77   :  { %743 = vmatpush3.bf16.msra.mxu0 %v816_v3  ;;  %v848_v38 = vld [vmem:[#allocation10 + $0x8] sm:$0xff]   ;;  %v851_v41 = vld [vmem:[#allocation10 + $0x20] sm:$0xff]   ;;  %v853_v43 = vld [vmem:[#allocation10 + $0x30] sm:$0xff]  }
  0x78   :  { %744 = vmatprep.subr.bf16.mxu0 %v1045_v0  ;;  %355 = vmatpush1.bf16.msra.mxu1 %v831_v12  ;;  %v852_v42 = vld [vmem:[#allocation10 + $0x28] sm:$0xff]   ;;  %v854_v44 = vld [vmem:[#allocation10 + $0x38] sm:$0xff]   ;;  %v855_v45 = vld [vmem:[#allocation11] sm:$0xff]  }
  0x79   :  { %356 = vmatprep.subr.bf16.mxu1 %v832_v13  ;;  %v856_v46 = vld [vmem:[#allocation11 + $0x8] sm:$0xff]   ;;  %v857_v47 = vld [vmem:[#allocation11 + $0x10] sm:$0xff]   ;;  %v858_v48 = vld [vmem:[#allocation11 + $0x18] sm:$0xff]  }
  0x7a   :  { %v859_v49 = vld [vmem:[#allocation11 + $0x20] sm:$0xff]   ;;  %v860_v50 = vld [vmem:[#allocation11 + $0x28] sm:$0xff]   ;;  %v393_v7 = vld [vmem:[#allocation5] sm:$0xff] }
  0x7b   :  { %745 = vmatpush3.bf16.msra.mxu0 %v817_v4  ;;  %v258_v54 = vld [vmem:[%s1251_s7] sm:$0x3]  ;;  %v394_v9 = vld [vmem:[#allocation5 + $0x8] sm:$0xff] }
  0x7c   :  { %746 = vmatprep.subr.bf16.mxu0 %v1045_v0  ;;  %357 = vmatpush1.bf16.msra.mxu1 %v834_v14  ;;  %v263_v56 = vrot.slane %v258_v54, %v262_v53  ;;  %v267_v57 = vrot.slane %v258_v54, %v266_v55 }
  0x7d   :  { %358 = vmatprep.subr.bf16.mxu1 %v835_v15 }
  0x7f   :  { %747 = vmatpush3.bf16.msra.mxu0 %v818_v10 }
  0x80   :  { %748 = vmatprep.subr.bf16.mxu0 %v1045_v0  ;;  %359 = vmatpush1.bf16.msra.mxu1 %v837_v17  ;;  %v862_v17 = vld [vmem:[#allocation11 + $0x38] sm:$0xff]  }
  0x81   :  { %360 = vmatprep.subr.bf16.mxu1 %v838_v18  ;;  %v693_v18 = vld [vmem:[%s1252_s8] ss:$0 sm:$0xff]  ;;  %s1048_s8 = smov [#allocation13]  }
  0x82   :  { %s652_s27 = sshll.u32 %s1048_s8, 4  ;;  %s653_s27 = int_to_ptr.vmem [resolvable:$true] %s652_s27 }
  0x83   :  { %749 = vmatpush3.bf16.msra.mxu0 %v819_v11  ;;  %p1008_p7 = scmp.lt.s32.totalorder %s653_s27, %s653_s27 }
  0x84   :  { %750 = vmatprep.subr.bf16.mxu0 %v1045_v0  ;;  %361 = vmatpush1.bf16.msra.mxu1 %v840_v20 }
  0x85   :  { %362 = vmatprep.subr.bf16.mxu1 %v841_v22 }
  0x87   :  { %751 = vmatpush3.bf16.msra.mxu0 %v820_v16  ;;  %v861_v16 = vld [vmem:[#allocation11 + $0x30] sm:$0xff]  }
  0x88   :  { %752 = vmatprep.subr.bf16.mxu0 %v1045_v0  ;;  %363 = vmatpush1.bf16.msra.mxu1 %v843_v23 }
  0x89   :  { %364 = vmatprep.subr.bf16.mxu1 %v844_v24 }
  0x8b   :  { %753 = vmatpush3.bf16.msra.mxu0 %v821_v19 }
  0x8c   :  { %758 = vmatprep.subr.bf16.mxu0 %v1045_v0  ;;  %365 = vmatpush1.bf16.msra.mxu1 %v846_v25 }
  0x8d   :  { %778 = vmatprep.subr.bf16.mxu1 %v1045_v0 }
  0x8e   :  { %755 = vmatmul.mubr.bf16.vlgmr.msra.gmra.mrb[0].mxu0 %v822_v21 }
  0x8f   :  { %774 = vmatprep.mubr.msk.bf16.mxu0 %vm1046_vm0, %v1045_v0  ;;  %759 = vmatpush3.bf16.msra.mxu0 %v847_v27 }
  0x90   :  { %760 = vmatprep.subr.bf16.mxu0 %v1045_v0 }
  0x93   :  { %761 = vmatpush3.bf16.msra.mxu0 %v848_v38 }
  0x94   :  { %762 = vmatprep.subr.bf16.mxu0 %v1045_v0 }
  0x97   :  { %763 = vmatpush3.bf16.msra.mxu0 %v849_v39 }
  0x98   :  { %764 = vmatprep.subr.bf16.mxu0 %v1045_v0 }
  0x9b   :  { %765 = vmatpush3.bf16.msra.mxu0 %v850_v40 }
  0x9c   :  { %766 = vmatprep.subr.bf16.mxu0 %v1045_v0 }
  0x9f   :  { %767 = vmatpush3.bf16.msra.mxu0 %v851_v41 }
  0xa0   :  { %768 = vmatprep.subr.bf16.mxu0 %v1045_v0 }
  0xa3   :  { %769 = vmatpush3.bf16.msra.mxu0 %v852_v42 }
  0xa4   :  { %770 = vmatprep.subr.bf16.mxu0 %v1045_v0 }
  0xa7   :  { %771 = vmatpush3.bf16.msra.mxu0 %v853_v43 }
  0xa8   :  { %772 = vmatprep.subr.bf16.mxu0 %v1045_v0 }
  0xab   :  { %773 = vmatpush3.bf16.msra.mxu0 %v854_v44 }
 0x161   :  { %v232_v29 = vpop.f32.mrb[0].mxu0 }
 0x162   :  { %v233_v30 = vadd.f32 %v667_v28, %v232_v29  ;;  %v756_v31 = vpop.f32.mrb[1].mxu0 }
 0x163   :  { %v235_v32 = vpop.f32.mrb[2].mxu0 }
 0x164   :  { %v236_v33 = vadd.f32 %v667_v28, %v235_v32  ;;  %v757_v34 = vpop.f32.mrb[3].mxu0  ;;  %v239_v35 = vmax.f32 %v233_v30, 0.0 }
 0x166   :  { %v240_v36 = vmax.f32 %v236_v33, 0.0 }
 0x168   :  { %v241_v37 = vpack.c.bf16 %v240_v36, %v239_v35 }
 0x16a   :  { %383 = vmatmul.mubr.bf16.vlgmr.msra.gmra.mrb[0].mxu1 %v241_v37 }
 0x16b   :  { %794 = vmatprep.mubr.msk.bf16.mxu1 %vm1046_vm0, %v1045_v0  ;;  %779 = vmatpush3.bf16.msra.mxu1 %v855_v45 }
 0x16c   :  { %780 = vmatprep.subr.bf16.mxu1 %v1045_v0 }
 0x16f   :  { %781 = vmatpush3.bf16.msra.mxu1 %v856_v46 }
 0x170   :  { %782 = vmatprep.subr.bf16.mxu1 %v1045_v0 }
 0x173   :  { %783 = vmatpush3.bf16.msra.mxu1 %v857_v47 }
 0x174   :  { %784 = vmatprep.subr.bf16.mxu1 %v1045_v0 }
 0x177   :  { %785 = vmatpush3.bf16.msra.mxu1 %v858_v48 }
 0x178   :  { %786 = vmatprep.subr.bf16.mxu1 %v1045_v0 }
 0x17b   :  { %787 = vmatpush3.bf16.msra.mxu1 %v859_v49 }
 0x17c   :  { %788 = vmatprep.subr.bf16.mxu1 %v1045_v0 }
 0x17f   :  { %789 = vmatpush3.bf16.msra.mxu1 %v860_v50 }
 0x180   :  { %790 = vmatprep.subr.bf16.mxu1 %v1045_v0 }
 0x183   :  { %791 = vmatpush3.bf16.msra.mxu1 %v861_v16 }
 0x184   :  { %792 = vmatprep.subr.bf16.mxu1 %v1045_v0  ;;  %v702_v0 = vld [vmem:[%s1253_s9] ss:$0 sm:$0xff]  ;;  %s1003_s9 = scalar_lea.vmem %s653_s27, 768 }
 0x185   :  { %p1004_p6 = scmp.ne.s32.totalorder %s653_s27, %s1003_s9  ;;  %p1009_p8 = scmp.lt.s32.totalorder %s1003_s9, %s1003_s9 }
 0x187   :  { %793 = vmatpush3.bf16.msra.mxu1 %v862_v17  ;;  %p1010_p9 = por %p1009_p8, %p1008_p7 }
 0x189   :  { %p1011_p10 = pnand %p1010_p9, %p1004_p6 }
 0x23d   :  { %v384_v58 = vpop.f32.mrb[0].mxu1 }
 0x23e   :  { %v385_v59 = vadd.f32 %v384_v58, %v263_v56  ;;  %v386_v60 = vpop.f32.mrb[1].mxu1 }
 0x23f   :  { %v387_v61 = vadd.f32 %v386_v60, %v267_v57  ;;  %v388_v62 = vpop.f32.mrb[2].mxu1 }
 0x240   :  { %643 = vst [vmem:[#allocation13 + $0x8] sm:$0xff] %v385_v59  ;;  %v389_v63 = vadd.f32 %v388_v62, %v263_v56  ;;  %v390_v1 = vpop.f32.mrb[3].mxu1 }
 0x241   :  { %v395_v2 = vmul.f32 0.5, %v387_v61  ;;  %645 = vst [vmem:[#allocation13 + $0x10] sm:$0xff] %v387_v61  ;;  %v391_v3 = vadd.f32 %v390_v1, %v267_v57 }
 0x242   :  { %644 = vst [vmem:[#allocation13 + $0x20] sm:$0xff] %v389_v63 }
 0x243   :  { %v397_v4 = vmul.f32 1.442695, %v395_v2  ;;  %v396_v5 = vmul.f32 0.5, %v391_v3  ;;  %646 = vst [vmem:[#allocation13 + $0x28] sm:$0xff] %v391_v3 }
 0x245   :  { %863 = vpow2.f32 %v397_v4  ;;  %v399_v6 = vmul.f32 1.442695, %v396_v5 }
 0x247   :  { %865 = vpow2.f32 %v399_v6 }
 0x24f   :  { %v864_v8 = vpop.eup %863 }
 0x250   :  { %v401_v10 = vmul.f32 %v864_v8, %v393_v7 }
 0x251   :  { %v866_v11 = vpop.eup %865 }
 0x252   :  { %v402_v12 = vmul.f32 %v866_v11, %v394_v9  ;;  %v403_v13 = vadd.f32 %v401_v10, %v385_v59 }
 0x254   :  { %v404_v14 = vadd.f32 %v402_v12, %v389_v63 }
 0x256   :  { %v405_v15 = vpack.c.bf16 %v404_v14, %v403_v13 }
 0x258   :  { %775 = vmatmul.mubr.bf16.vlgmr.msra.gmra.mrb[4].mxu0 %v405_v15 }
 0x32b   :  { %v511_v19 = vpop.f32.mrb[4].mxu0 }
 0x32c   :  { %v512_v20 = vadd.f32 %v693_v18, %v511_v19  ;;  %v776_v21 = vpop.f32.mrb[5].mxu0 }
 0x32d   :  { %v514_v22 = vpop.f32.mrb[6].mxu0 }
 0x32e   :  { %v515_v23 = vadd.f32 %v693_v18, %v514_v22  ;;  %v777_v24 = vpop.f32.mrb[7].mxu0  ;;  %v518_v25 = vmax.f32 %v512_v20, 0.0 }
 0x330   :  { %v519_v26 = vmax.f32 %v515_v23, 0.0 }
 0x332   :  { %v520_v27 = vpack.c.bf16 %v519_v26, %v518_v25 }
 0x334   :  { %795 = vmatmul.mubr.bf16.vlgmr.msra.gmra.mrb[4].mxu1 %v520_v27 }
 0x407   :  { %v626_v28 = vpop.f32.mrb[4].mxu1 }
 0x408   :  { %v627_v29 = vadd.f32 %v702_v0, %v626_v28  ;;  %v796_v30 = vpop.f32.mrb[5].mxu1 }
 0x409   :  { %v629_v31 = vpop.f32.mrb[6].mxu1 }
 0x40a   :  { %v633_v32 = vmul.f32 0.5, %v627_v29  ;;  %v630_v33 = vadd.f32 %v702_v0, %v629_v31  ;;  %v797_v34 = vpop.f32.mrb[7].mxu1 }
 0x40c   :  { %867 = vtanh.f32 %v633_v32  ;;  %v634_v35 = vmul.f32 0.5, %v630_v33 }
 0x40e   :  { %869 = vtanh.f32 %v634_v35 }
 0x416   :  { %v868_v36 = vpop.eup %867 }
 0x417   :  { %v637_v37 = vadd.f32 1.0, %v868_v36 }
 0x418   :  { %v870_v38 = vpop.eup %869 }
 0x419   :  { %v639_v39 = vmul.f32 0.5, %v637_v37  ;;  %v638_v40 = vadd.f32 1.0, %v870_v38 }
 0x41b   :  { %641 = vst [vmem:[#allocation13] sm:$0xff] %v639_v39  ;;  %v640_v41 = vmul.f32 0.5, %v638_v40 }
 0x41d   :  { %642 = vst [vmem:[#allocation13 + $0x18] sm:$0xff] %v640_v41 }
 0x41e   :  { %1014 = shalt.err (!%p1011_p10)
}
 0x41f   :  { %s1015_s24 = scalar_lea.hbm %s1254_s10, 768 }
 0x420   :  { %p1016_p11 = scmp.ne.s32.totalorder %s1254_s10, %s1015_s24  ;;  %p1019_p12 = scmp.lt.u32.totalorder %s1015_s24, %s1254_s10 }
 0x422   :  { %p1021_p13 = pnand %p1019_p12, %p1016_p11 }
 0x424   :  { %1024 = shalt.err (!%p1021_p13)
}
 0x425   :  { %s1049_s15 = smov 384   ;;  %s1050_s17 = smov 24  }
 0x426   :  { %658 = dma.vmem_to_hbm [thread:$0]  %s653_s27, 768, %s1254_s10, [#allocation4], %s1049_s15, %s1049_s15, %s1050_s17  }
 0x427   :  { %1033 = dma.done.wait [#allocation4], 768  }
 0x428   :  { %1034 = vsyncadd [#allocation4], 4294966528 }
 0x429   :  { %662 = vsyncpa [#allocation3], 1 }
 0x42a   :  { %663 = vsyncpa [#allocation6], 1 }
 0x42b   :  { %664 = vsyncpa [#allocation9], 1 }
 0x42c   :  { %665 = vsyncpa [#allocation12], 1 }
 0x42d   :  { %666 = vsyncpa [#allocation4], 1 }

</bundles_post_ra>
